<compile_context>
chip_gen: v5e
topology: v5e:2x2
jax: 0.10.0
libtpu: 0.0.40
codegen_flags: <defaults>
</compile_context>

<pallas_src>
import functools
import math

import jax
import jax.numpy as jnp
from jax import lax
from jax.experimental import pallas as pl
from jax.experimental.pallas import tpu as pltpu


# ----------------------------------------------------------------------------
# Fused Pallas kernel: entire forward pass
# ----------------------------------------------------------------------------
def _make_fused_kernel(layer_cfgs):
    """layer_cfgs: tuple of (heads, head_dim) per conv layer (static)."""
    n_layers = len(layer_cfgs)

    def kernel(*refs):
        x_ref, adj_ref, pool_ref = refs[:3]
        wb_refs = refs[3:3 + 2 * n_layers]                # w0, b0, w1, b1, ...
        fcw_ref, fcb_ref = refs[3 + 2 * n_layers:5 + 2 * n_layers]
        out_ref = refs[5 + 2 * n_layers]

        x = x_ref[...]
        adj = adj_ref[...]

        # Layer-invariant masked-softmax bias, hoisted out of all layer/head loops.
        mask_bias = jnp.where(adj > 0, jnp.float32(0.0), jnp.float32(-1e30))

        for li, (heads, head_dim) in enumerate(layer_cfgs):
            w_ref = wb_refs[2 * li]
            b_ref = wb_refs[2 * li + 1]
            hc = heads * head_dim
            scale = jnp.float32(1.0 / math.sqrt(head_dim))

            # One packed projection: (N, fin) @ (fin, 4*hc) -> [q | k | v | skip]
            qkvs = jnp.dot(x, w_ref[...], preferred_element_type=jnp.float32) + b_ref[...]
            q = qkvs[:, 0 * hc:1 * hc]
            k = qkvs[:, 1 * hc:2 * hc]
            v = qkvs[:, 2 * hc:3 * hc]
            skip = qkvs[:, 3 * hc:4 * hc]

            head_outs = []
            for h in range(heads):                        # static unroll (heads <= 3)
                sl = slice(h * head_dim, (h + 1) * head_dim)
                qh, kh, vh = q[:, sl], k[:, sl], v[:, sl]
                # scores[i, j] = <q_i, k_j> / sqrt(C); contract last dims (no transpose).
                scores = lax.dot_general(
                    qh, kh, (((1,), (1,)), ((), ())),
                    preferred_element_type=jnp.float32) * scale
                scores = scores + mask_bias
                m = jnp.max(scores, axis=1, keepdims=True)
                p = jnp.exp(scores - m) * adj             # re-mask (isolated nodes -> 0)
                denom = jnp.sum(p, axis=1, keepdims=True)
                denom = jnp.where(denom > 0, denom, jnp.float32(1.0))
                # (p / denom) @ v  ==  (p @ v) / denom  (row-wise denom): divide the small
                # (N, head_dim) result instead of the (N, N) matrix.
                attn = jnp.dot(p, vh, preferred_element_type=jnp.float32) / denom
                head_outs.append(attn)

            attn_all = head_outs[0] if heads == 1 else jnp.concatenate(head_outs, axis=1)
            x = attn_all + skip                           # stays VMEM-resident across layers

        # global_mean_pool + Linear + log_softmax(dim=1)
        pooled = jnp.dot(pool_ref[...], x, preferred_element_type=jnp.float32)      # (G, F)
        y = jnp.dot(pooled, fcw_ref[...], preferred_element_type=jnp.float32) + fcb_ref[...]
        m = jnp.max(y, axis=1, keepdims=True)
        z = y - m
        lse = jnp.log(jnp.sum(jnp.exp(z), axis=1, keepdims=True))
        out_ref[...] = z - lse

    return kernel


_VMEM = pl.BlockSpec(memory_space=pltpu.MemorySpace.VMEM)


def transformer_conv_net_forward(x, adj, pool, params, layer_cfgs):
    g = pool.shape[0]
    out_dim = params["fc_w"].shape[1]

    args = [x, adj, pool]
    for lp in params["conv"]:
        args += [lp["w"], lp["b"]]
    args += [params["fc_w"], params["fc_b"]]

    kernel = _make_fused_kernel(tuple(layer_cfgs))
    return pl.pallas_call(
        kernel,
        out_shape=jax.ShapeDtypeStruct((g, out_dim), jnp.float32),
        in_specs=[_VMEM] * len(args),
        out_specs=_VMEM,
    )(*args)


# ----------------------------------------------------------------------------
# Pure-JAX reference (same math) for validation
# ----------------------------------------------------------------------------
def _ref_forward(x, adj, pool, params, layer_cfgs):
    mask_bias = jnp.where(adj > 0, 0.0, -1e30)
    for lp, (heads, hd) in zip(params["conv"], layer_cfgs):
        hc = heads * hd
        qkvs = x @ lp["w"] + lp["b"]
        q, k, v, skip = (qkvs[:, i * hc:(i + 1) * hc] for i in range(4))
        outs = []
        for h in range(heads):
            sl = slice(h * hd, (h + 1) * hd)
            scores = (q[:, sl] @ k[:, sl].T) / math.sqrt(hd) + mask_bias
            m = jnp.max(scores, axis=1, keepdims=True)
            p = jnp.exp(scores - m) * adj
            denom = jnp.sum(p, axis=1, keepdims=True)
            denom = jnp.where(denom > 0, denom, 1.0)
            outs.append((p @ v[:, sl]) / denom)
        x = jnp.concatenate(outs, axis=1) + skip
    pooled = pool @ x
    y = pooled @ params["fc_w"] + params["fc_b"]
    return jax.nn.log_softmax(y, axis=1)


# ----------------------------------------------------------------------------
# Deterministic parameter construction (packed [Wq|Wk|Wv|Wskip] per layer)
# ----------------------------------------------------------------------------
def make_params(key, in_dims, heads_per_layer, head_dims, out_dim):
    conv_params = []
    for fin, h, c in zip(in_dims, heads_per_layer, head_dims):
        hc = h * c
        key, kw, kb = jax.random.split(key, 3)
        w = jax.random.normal(kw, (fin, 4 * hc), jnp.float32) / math.sqrt(fin)
        b = 0.1 * jax.random.normal(kb, (1, 4 * hc), jnp.float32)
        conv_params.append({"w": w, "b": b})
    f_last = heads_per_layer[-1] * head_dims[-1]
    key, k1, k2 = jax.random.split(key, 3)
    fc_w = jax.random.normal(k1, (f_last, out_dim), jnp.float32) / math.sqrt(f_last)
    fc_b = 0.1 * jax.random.normal(k2, (1, out_dim), jnp.float32)
    return {"conv": conv_params, "fc_w": fc_w, "fc_b": fc_b}


# ----------------------------------------------------------------------------
# Main
# ----------------------------------------------------------------------------
if __name__ == "__main__":
    # Module config
    out_dim = 5
    input_features = 6
    output_channels = 4
    layers_num = 3
    model_dim = 8
    hidden_sf, out_sf, hidden_heads = 1, 1, 3

    # Derived per-layer shapes (matches TransformerConvNet.__init__)
    heads_per_layer = [hidden_heads] + [max(1, hidden_heads - 2)] * (layers_num - 2) + [1]
    head_dims = ([hidden_sf * model_dim]
                 + [hidden_sf * hidden_heads * model_dim] * (layers_num - 2)
                 + [out_sf * output_channels])
    in_dims = ([input_features]
               + [hidden_sf * hidden_heads * model_dim] * (layers_num - 2)
               + [hidden_sf * max(1, hidden_heads - 2) * hidden_heads * model_dim])
    layer_cfgs = list(zip(heads_per_layer, head_dims))

    # Synthetic graph batch: 2 graphs x 8 nodes, bidirectional ring edges within each graph.
    num_graphs, nodes_per_graph = 2, 8
    n_nodes = num_graphs * nodes_per_graph
    src, dst = [], []
    for g in range(num_graphs):
        for i in range(nodes_per_graph):
            a = g * nodes_per_graph + i
            b = g * nodes_per_graph + (i + 1) % nodes_per_graph
            src += [a, b]
            dst += [b, a]
    edge_index = jnp.array([src, dst], dtype=jnp.int32)            # [2, E], PyG convention
    batch = jnp.repeat(jnp.arange(num_graphs, dtype=jnp.int32), nodes_per_graph)

    # Densify connectivity: adj[i, j] = 1 iff edge j -> i ; pool[g, i] = 1/|graph_g|
    adj = jnp.zeros((n_nodes, n_nodes), jnp.float32).at[edge_index[1], edge_index[0]].set(1.0)
    onehot = (batch[None, :] == jnp.arange(num_graphs)[:, None]).astype(jnp.float32)
    pool = onehot / jnp.sum(onehot, axis=1, keepdims=True)

    key = jax.random.PRNGKey(0)
    key, kx = jax.random.split(key)
    x = jax.random.normal(kx, (n_nodes, input_features), jnp.float32)
    params = make_params(key, in_dims, heads_per_layer, head_dims, out_dim)

    out = transformer_conv_net_forward(x, adj, pool, params, layer_cfgs)
    out = jax.block_until_ready(out)

    ref = _ref_forward(x, adj, pool, params, layer_cfgs)
    assert out.shape == (num_graphs, out_dim)
    assert jnp.allclose(out, ref, atol=1e-4, rtol=1e-4), (out, ref)

    print("KERNEL_OK")
</pallas_src>

<mosaic_0001>
module attributes {stable_mosaic.version = 11 : i64} {
  func.func @kernel(%arg0: memref<16x6xf32, #tpu.memory_space<vmem>>, %arg1: memref<16x16xf32, #tpu.memory_space<vmem>>, %arg2: memref<2x16xf32, #tpu.memory_space<vmem>>, %arg3: memref<6x96xf32, #tpu.memory_space<vmem>>, %arg4: memref<1x96xf32, #tpu.memory_space<vmem>>, %arg5: memref<24x96xf32, #tpu.memory_space<vmem>>, %arg6: memref<1x96xf32, #tpu.memory_space<vmem>>, %arg7: memref<24x16xf32, #tpu.memory_space<vmem>>, %arg8: memref<1x16xf32, #tpu.memory_space<vmem>>, %arg9: memref<4x5xf32, #tpu.memory_space<vmem>>, %arg10: memref<1x5xf32, #tpu.memory_space<vmem>>, %arg11: memref<2x5xf32, #tpu.memory_space<vmem>>) attributes {dimension_semantics = [], scalar_prefetch = 0 : i64, scratch_operands = 0 : i64, tpu.core_type = #tpu.core_type<tc>} {
    %c0 = arith.constant 0 : index
    %c0_0 = arith.constant 0 : index
    %0 = vector.load %arg0[%c0, %c0_0] : memref<16x6xf32, #tpu.memory_space<vmem>>, vector<16x6xf32>
    %c0_1 = arith.constant 0 : index
    %c0_2 = arith.constant 0 : index
    %1 = vector.load %arg1[%c0_1, %c0_2] : memref<16x16xf32, #tpu.memory_space<vmem>>, vector<16x16xf32>
    %cst = arith.constant 0.000000e+00 : f32
    %2 = vector.broadcast %cst : f32 to vector<16x16xf32>
    %3 = arith.cmpf ogt, %1, %2 : vector<16x16xf32>
    %cst_3 = arith.constant 0.000000e+00 : f32
    %cst_4 = arith.constant -1.000000e+30 : f32
    %4 = vector.broadcast %cst_3 : f32 to vector<16x16xf32>
    %5 = vector.broadcast %cst_4 : f32 to vector<16x16xf32>
    %6 = arith.select %3, %4, %5 : vector<16x16xi1>, vector<16x16xf32>
    %c0_5 = arith.constant 0 : index
    %c0_6 = arith.constant 0 : index
    %7 = vector.load %arg3[%c0_5, %c0_6] : memref<6x96xf32, #tpu.memory_space<vmem>>, vector<6x96xf32>
    %cst_7 = arith.constant dense<0.000000e+00> : vector<16x96xf32>
    %8 = tpu.matmul %0, %7, %cst_7 {dimension_numbers = #tpu.dot_dimension_numbers<[1], [0], [0], [1], [0, 0, 1, 1], [], []>} : vector<16x6xf32>, vector<6x96xf32>, vector<16x96xf32> -> vector<16x96xf32>
    %c0_8 = arith.constant 0 : index
    %c0_9 = arith.constant 0 : index
    %9 = vector.load %arg4[%c0_8, %c0_9] : memref<1x96xf32, #tpu.memory_space<vmem>>, vector<1x96xf32>
    %10 = vector.broadcast %9 : vector<1x96xf32> to vector<16x96xf32>
    %11 = arith.addf %8, %10 : vector<16x96xf32>
    %12 = vector.extract_strided_slice %11 {offsets = [0, 0], sizes = [16, 24], strides = [1, 1]} : vector<16x96xf32> to vector<16x24xf32>
    %13 = vector.extract_strided_slice %11 {offsets = [0, 24], sizes = [16, 24], strides = [1, 1]} : vector<16x96xf32> to vector<16x24xf32>
    %14 = vector.extract_strided_slice %11 {offsets = [0, 48], sizes = [16, 24], strides = [1, 1]} : vector<16x96xf32> to vector<16x24xf32>
    %15 = vector.extract_strided_slice %11 {offsets = [0, 72], sizes = [16, 24], strides = [1, 1]} : vector<16x96xf32> to vector<16x24xf32>
    %16 = vector.extract_strided_slice %12 {offsets = [0, 0], sizes = [16, 8], strides = [1, 1]} : vector<16x24xf32> to vector<16x8xf32>
    %17 = vector.extract_strided_slice %13 {offsets = [0, 0], sizes = [16, 8], strides = [1, 1]} : vector<16x24xf32> to vector<16x8xf32>
    %18 = vector.extract_strided_slice %14 {offsets = [0, 0], sizes = [16, 8], strides = [1, 1]} : vector<16x24xf32> to vector<16x8xf32>
    %cst_10 = arith.constant dense<0.000000e+00> : vector<16x16xf32>
    %19 = tpu.matmul %16, %17, %cst_10 {dimension_numbers = #tpu.dot_dimension_numbers<[1], [1], [0], [0], [0, 0, 1, 0], [], []>} : vector<16x8xf32>, vector<16x8xf32>, vector<16x16xf32> -> vector<16x16xf32>
    %cst_11 = arith.constant 0.353553385 : f32
    %20 = vector.broadcast %cst_11 : f32 to vector<16x16xf32>
    %21 = arith.mulf %19, %20 : vector<16x16xf32>
    %22 = arith.addf %21, %6 : vector<16x16xf32>
    %cst_12 = arith.constant dense<0xFF800000> : vector<16xf32>
    %23 = vector.multi_reduction <maximumf>, %22, %cst_12 [1] : vector<16x16xf32> to vector<16xf32>
    %24 = vector.shape_cast %23 : vector<16xf32> to vector<16x1xf32>
    %25 = vector.broadcast %24 : vector<16x1xf32> to vector<16x16xf32>
    %26 = arith.subf %22, %25 : vector<16x16xf32>
    %27 = math.exp %26 : vector<16x16xf32>
    %28 = arith.mulf %27, %1 : vector<16x16xf32>
    %cst_13 = arith.constant dense<0.000000e+00> : vector<16xf32>
    %29 = vector.multi_reduction <add>, %28, %cst_13 [1] : vector<16x16xf32> to vector<16xf32>
    %30 = vector.shape_cast %29 : vector<16xf32> to vector<16x1xf32>
    %cst_14 = arith.constant 0.000000e+00 : f32
    %31 = vector.broadcast %cst_14 : f32 to vector<16x1xf32>
    %32 = arith.cmpf ogt, %30, %31 : vector<16x1xf32>
    %cst_15 = arith.constant 1.000000e+00 : f32
    %33 = vector.broadcast %cst_15 : f32 to vector<16x1xf32>
    %34 = arith.select %32, %30, %33 : vector<16x1xi1>, vector<16x1xf32>
    %cst_16 = arith.constant dense<0.000000e+00> : vector<16x8xf32>
    %35 = tpu.matmul %28, %18, %cst_16 {dimension_numbers = #tpu.dot_dimension_numbers<[1], [0], [0], [1], [0, 0, 1, 1], [], []>} : vector<16x16xf32>, vector<16x8xf32>, vector<16x8xf32> -> vector<16x8xf32>
    %36 = vector.broadcast %34 : vector<16x1xf32> to vector<16x8xf32>
    %37 = arith.divf %35, %36 : vector<16x8xf32>
    %38 = vector.extract_strided_slice %12 {offsets = [0, 8], sizes = [16, 8], strides = [1, 1]} : vector<16x24xf32> to vector<16x8xf32>
    %39 = vector.extract_strided_slice %13 {offsets = [0, 8], sizes = [16, 8], strides = [1, 1]} : vector<16x24xf32> to vector<16x8xf32>
    %40 = vector.extract_strided_slice %14 {offsets = [0, 8], sizes = [16, 8], strides = [1, 1]} : vector<16x24xf32> to vector<16x8xf32>
    %cst_17 = arith.constant dense<0.000000e+00> : vector<16x16xf32>
    %41 = tpu.matmul %38, %39, %cst_17 {dimension_numbers = #tpu.dot_dimension_numbers<[1], [1], [0], [0], [0, 0, 1, 0], [], []>} : vector<16x8xf32>, vector<16x8xf32>, vector<16x16xf32> -> vector<16x16xf32>
    %cst_18 = arith.constant 0.353553385 : f32
    %42 = vector.broadcast %cst_18 : f32 to vector<16x16xf32>
    %43 = arith.mulf %41, %42 : vector<16x16xf32>
    %44 = arith.addf %43, %6 : vector<16x16xf32>
    %cst_19 = arith.constant dense<0xFF800000> : vector<16xf32>
    %45 = vector.multi_reduction <maximumf>, %44, %cst_19 [1] : vector<16x16xf32> to vector<16xf32>
    %46 = vector.shape_cast %45 : vector<16xf32> to vector<16x1xf32>
    %47 = vector.broadcast %46 : vector<16x1xf32> to vector<16x16xf32>
    %48 = arith.subf %44, %47 : vector<16x16xf32>
    %49 = math.exp %48 : vector<16x16xf32>
    %50 = arith.mulf %49, %1 : vector<16x16xf32>
    %cst_20 = arith.constant dense<0.000000e+00> : vector<16xf32>
    %51 = vector.multi_reduction <add>, %50, %cst_20 [1] : vector<16x16xf32> to vector<16xf32>
    %52 = vector.shape_cast %51 : vector<16xf32> to vector<16x1xf32>
    %cst_21 = arith.constant 0.000000e+00 : f32
    %53 = vector.broadcast %cst_21 : f32 to vector<16x1xf32>
    %54 = arith.cmpf ogt, %52, %53 : vector<16x1xf32>
    %cst_22 = arith.constant 1.000000e+00 : f32
    %55 = vector.broadcast %cst_22 : f32 to vector<16x1xf32>
    %56 = arith.select %54, %52, %55 : vector<16x1xi1>, vector<16x1xf32>
    %cst_23 = arith.constant dense<0.000000e+00> : vector<16x8xf32>
    %57 = tpu.matmul %50, %40, %cst_23 {dimension_numbers = #tpu.dot_dimension_numbers<[1], [0], [0], [1], [0, 0, 1, 1], [], []>} : vector<16x16xf32>, vector<16x8xf32>, vector<16x8xf32> -> vector<16x8xf32>
    %58 = vector.broadcast %56 : vector<16x1xf32> to vector<16x8xf32>
    %59 = arith.divf %57, %58 : vector<16x8xf32>
    %60 = vector.extract_strided_slice %12 {offsets = [0, 16], sizes = [16, 8], strides = [1, 1]} : vector<16x24xf32> to vector<16x8xf32>
    %61 = vector.extract_strided_slice %13 {offsets = [0, 16], sizes = [16, 8], strides = [1, 1]} : vector<16x24xf32> to vector<16x8xf32>
    %62 = vector.extract_strided_slice %14 {offsets = [0, 16], sizes = [16, 8], strides = [1, 1]} : vector<16x24xf32> to vector<16x8xf32>
    %cst_24 = arith.constant dense<0.000000e+00> : vector<16x16xf32>
    %63 = tpu.matmul %60, %61, %cst_24 {dimension_numbers = #tpu.dot_dimension_numbers<[1], [1], [0], [0], [0, 0, 1, 0], [], []>} : vector<16x8xf32>, vector<16x8xf32>, vector<16x16xf32> -> vector<16x16xf32>
    %cst_25 = arith.constant 0.353553385 : f32
    %64 = vector.broadcast %cst_25 : f32 to vector<16x16xf32>
    %65 = arith.mulf %63, %64 : vector<16x16xf32>
    %66 = arith.addf %65, %6 : vector<16x16xf32>
    %cst_26 = arith.constant dense<0xFF800000> : vector<16xf32>
    %67 = vector.multi_reduction <maximumf>, %66, %cst_26 [1] : vector<16x16xf32> to vector<16xf32>
    %68 = vector.shape_cast %67 : vector<16xf32> to vector<16x1xf32>
    %69 = vector.broadcast %68 : vector<16x1xf32> to vector<16x16xf32>
    %70 = arith.subf %66, %69 : vector<16x16xf32>
    %71 = math.exp %70 : vector<16x16xf32>
    %72 = arith.mulf %71, %1 : vector<16x16xf32>
    %cst_27 = arith.constant dense<0.000000e+00> : vector<16xf32>
    %73 = vector.multi_reduction <add>, %72, %cst_27 [1] : vector<16x16xf32> to vector<16xf32>
    %74 = vector.shape_cast %73 : vector<16xf32> to vector<16x1xf32>
    %cst_28 = arith.constant 0.000000e+00 : f32
    %75 = vector.broadcast %cst_28 : f32 to vector<16x1xf32>
    %76 = arith.cmpf ogt, %74, %75 : vector<16x1xf32>
    %cst_29 = arith.constant 1.000000e+00 : f32
    %77 = vector.broadcast %cst_29 : f32 to vector<16x1xf32>
    %78 = arith.select %76, %74, %77 : vector<16x1xi1>, vector<16x1xf32>
    %cst_30 = arith.constant dense<0.000000e+00> : vector<16x8xf32>
    %79 = tpu.matmul %72, %62, %cst_30 {dimension_numbers = #tpu.dot_dimension_numbers<[1], [0], [0], [1], [0, 0, 1, 1], [], []>} : vector<16x16xf32>, vector<16x8xf32>, vector<16x8xf32> -> vector<16x8xf32>
    %80 = vector.broadcast %78 : vector<16x1xf32> to vector<16x8xf32>
    %81 = arith.divf %79, %80 : vector<16x8xf32>
    %82 = tpu.concatenate %37, %59, %81 in 1 : vector<16x8xf32>, vector<16x8xf32>, vector<16x8xf32> -> vector<16x24xf32>
    %83 = arith.addf %82, %15 : vector<16x24xf32>
    %c0_31 = arith.constant 0 : index
    %c0_32 = arith.constant 0 : index
    %84 = vector.load %arg5[%c0_31, %c0_32] : memref<24x96xf32, #tpu.memory_space<vmem>>, vector<24x96xf32>
    %cst_33 = arith.constant dense<0.000000e+00> : vector<16x96xf32>
    %85 = tpu.matmul %83, %84, %cst_33 {dimension_numbers = #tpu.dot_dimension_numbers<[1], [0], [0], [1], [0, 0, 1, 1], [], []>} : vector<16x24xf32>, vector<24x96xf32>, vector<16x96xf32> -> vector<16x96xf32>
    %c0_34 = arith.constant 0 : index
    %c0_35 = arith.constant 0 : index
    %86 = vector.load %arg6[%c0_34, %c0_35] : memref<1x96xf32, #tpu.memory_space<vmem>>, vector<1x96xf32>
    %87 = vector.broadcast %86 : vector<1x96xf32> to vector<16x96xf32>
    %88 = arith.addf %85, %87 : vector<16x96xf32>
    %89 = vector.extract_strided_slice %88 {offsets = [0, 0], sizes = [16, 24], strides = [1, 1]} : vector<16x96xf32> to vector<16x24xf32>
    %90 = vector.extract_strided_slice %88 {offsets = [0, 24], sizes = [16, 24], strides = [1, 1]} : vector<16x96xf32> to vector<16x24xf32>
    %91 = vector.extract_strided_slice %88 {offsets = [0, 48], sizes = [16, 24], strides = [1, 1]} : vector<16x96xf32> to vector<16x24xf32>
    %92 = vector.extract_strided_slice %88 {offsets = [0, 72], sizes = [16, 24], strides = [1, 1]} : vector<16x96xf32> to vector<16x24xf32>
    %cst_36 = arith.constant dense<0.000000e+00> : vector<16x16xf32>
    %93 = tpu.matmul %89, %90, %cst_36 {dimension_numbers = #tpu.dot_dimension_numbers<[1], [1], [0], [0], [0, 0, 1, 0], [], []>} : vector<16x24xf32>, vector<16x24xf32>, vector<16x16xf32> -> vector<16x16xf32>
    %cst_37 = arith.constant 0.204124153 : f32
    %94 = vector.broadcast %cst_37 : f32 to vector<16x16xf32>
    %95 = arith.mulf %93, %94 : vector<16x16xf32>
    %96 = arith.addf %95, %6 : vector<16x16xf32>
    %cst_38 = arith.constant dense<0xFF800000> : vector<16xf32>
    %97 = vector.multi_reduction <maximumf>, %96, %cst_38 [1] : vector<16x16xf32> to vector<16xf32>
    %98 = vector.shape_cast %97 : vector<16xf32> to vector<16x1xf32>
    %99 = vector.broadcast %98 : vector<16x1xf32> to vector<16x16xf32>
    %100 = arith.subf %96, %99 : vector<16x16xf32>
    %101 = math.exp %100 : vector<16x16xf32>
    %102 = arith.mulf %101, %1 : vector<16x16xf32>
    %cst_39 = arith.constant dense<0.000000e+00> : vector<16xf32>
    %103 = vector.multi_reduction <add>, %102, %cst_39 [1] : vector<16x16xf32> to vector<16xf32>
    %104 = vector.shape_cast %103 : vector<16xf32> to vector<16x1xf32>
    %cst_40 = arith.constant 0.000000e+00 : f32
    %105 = vector.broadcast %cst_40 : f32 to vector<16x1xf32>
    %106 = arith.cmpf ogt, %104, %105 : vector<16x1xf32>
    %cst_41 = arith.constant 1.000000e+00 : f32
    %107 = vector.broadcast %cst_41 : f32 to vector<16x1xf32>
    %108 = arith.select %106, %104, %107 : vector<16x1xi1>, vector<16x1xf32>
    %cst_42 = arith.constant dense<0.000000e+00> : vector<16x24xf32>
    %109 = tpu.matmul %102, %91, %cst_42 {dimension_numbers = #tpu.dot_dimension_numbers<[1], [0], [0], [1], [0, 0, 1, 1], [], []>} : vector<16x16xf32>, vector<16x24xf32>, vector<16x24xf32> -> vector<16x24xf32>
    %110 = vector.broadcast %108 : vector<16x1xf32> to vector<16x24xf32>
    %111 = arith.divf %109, %110 : vector<16x24xf32>
    %112 = arith.addf %111, %92 : vector<16x24xf32>
    %c0_43 = arith.constant 0 : index
    %c0_44 = arith.constant 0 : index
    %113 = vector.load %arg7[%c0_43, %c0_44] : memref<24x16xf32, #tpu.memory_space<vmem>>, vector<24x16xf32>
    %cst_45 = arith.constant dense<0.000000e+00> : vector<16x16xf32>
    %114 = tpu.matmul %112, %113, %cst_45 {dimension_numbers = #tpu.dot_dimension_numbers<[1], [0], [0], [1], [0, 0, 1, 1], [], []>} : vector<16x24xf32>, vector<24x16xf32>, vector<16x16xf32> -> vector<16x16xf32>
    %c0_46 = arith.constant 0 : index
    %c0_47 = arith.constant 0 : index
    %115 = vector.load %arg8[%c0_46, %c0_47] : memref<1x16xf32, #tpu.memory_space<vmem>>, vector<1x16xf32>
    %116 = vector.broadcast %115 : vector<1x16xf32> to vector<16x16xf32>
    %117 = arith.addf %114, %116 : vector<16x16xf32>
    %118 = vector.extract_strided_slice %117 {offsets = [0, 0], sizes = [16, 4], strides = [1, 1]} : vector<16x16xf32> to vector<16x4xf32>
    %119 = vector.extract_strided_slice %117 {offsets = [0, 4], sizes = [16, 4], strides = [1, 1]} : vector<16x16xf32> to vector<16x4xf32>
    %120 = vector.extract_strided_slice %117 {offsets = [0, 8], sizes = [16, 4], strides = [1, 1]} : vector<16x16xf32> to vector<16x4xf32>
    %121 = vector.extract_strided_slice %117 {offsets = [0, 12], sizes = [16, 4], strides = [1, 1]} : vector<16x16xf32> to vector<16x4xf32>
    %cst_48 = arith.constant dense<0.000000e+00> : vector<16x16xf32>
    %122 = tpu.matmul %118, %119, %cst_48 {dimension_numbers = #tpu.dot_dimension_numbers<[1], [1], [0], [0], [0, 0, 1, 0], [], []>} : vector<16x4xf32>, vector<16x4xf32>, vector<16x16xf32> -> vector<16x16xf32>
    %cst_49 = arith.constant 5.000000e-01 : f32
    %123 = vector.broadcast %cst_49 : f32 to vector<16x16xf32>
    %124 = arith.mulf %122, %123 : vector<16x16xf32>
    %125 = arith.addf %124, %6 : vector<16x16xf32>
    %cst_50 = arith.constant dense<0xFF800000> : vector<16xf32>
    %126 = vector.multi_reduction <maximumf>, %125, %cst_50 [1] : vector<16x16xf32> to vector<16xf32>
    %127 = vector.shape_cast %126 : vector<16xf32> to vector<16x1xf32>
    %128 = vector.broadcast %127 : vector<16x1xf32> to vector<16x16xf32>
    %129 = arith.subf %125, %128 : vector<16x16xf32>
    %130 = math.exp %129 : vector<16x16xf32>
    %131 = arith.mulf %130, %1 : vector<16x16xf32>
    %cst_51 = arith.constant dense<0.000000e+00> : vector<16xf32>
    %132 = vector.multi_reduction <add>, %131, %cst_51 [1] : vector<16x16xf32> to vector<16xf32>
    %133 = vector.shape_cast %132 : vector<16xf32> to vector<16x1xf32>
    %cst_52 = arith.constant 0.000000e+00 : f32
    %134 = vector.broadcast %cst_52 : f32 to vector<16x1xf32>
    %135 = arith.cmpf ogt, %133, %134 : vector<16x1xf32>
    %cst_53 = arith.constant 1.000000e+00 : f32
    %136 = vector.broadcast %cst_53 : f32 to vector<16x1xf32>
    %137 = arith.select %135, %133, %136 : vector<16x1xi1>, vector<16x1xf32>
    %cst_54 = arith.constant dense<0.000000e+00> : vector<16x4xf32>
    %138 = tpu.matmul %131, %120, %cst_54 {dimension_numbers = #tpu.dot_dimension_numbers<[1], [0], [0], [1], [0, 0, 1, 1], [], []>} : vector<16x16xf32>, vector<16x4xf32>, vector<16x4xf32> -> vector<16x4xf32>
    %139 = vector.broadcast %137 : vector<16x1xf32> to vector<16x4xf32>
    %140 = arith.divf %138, %139 : vector<16x4xf32>
    %141 = arith.addf %140, %121 : vector<16x4xf32>
    %c0_55 = arith.constant 0 : index
    %c0_56 = arith.constant 0 : index
    %142 = vector.load %arg2[%c0_55, %c0_56] : memref<2x16xf32, #tpu.memory_space<vmem>>, vector<2x16xf32>
    %cst_57 = arith.constant dense<0.000000e+00> : vector<2x4xf32>
    %143 = tpu.matmul %142, %141, %cst_57 {dimension_numbers = #tpu.dot_dimension_numbers<[1], [0], [0], [1], [0, 0, 1, 1], [], []>} : vector<2x16xf32>, vector<16x4xf32>, vector<2x4xf32> -> vector<2x4xf32>
    %c0_58 = arith.constant 0 : index
    %c0_59 = arith.constant 0 : index
    %144 = vector.load %arg9[%c0_58, %c0_59] : memref<4x5xf32, #tpu.memory_space<vmem>>, vector<4x5xf32>
    %cst_60 = arith.constant dense<0.000000e+00> : vector<2x5xf32>
    %145 = tpu.matmul %143, %144, %cst_60 {dimension_numbers = #tpu.dot_dimension_numbers<[1], [0], [0], [1], [0, 0, 1, 1], [], []>} : vector<2x4xf32>, vector<4x5xf32>, vector<2x5xf32> -> vector<2x5xf32>
    %c0_61 = arith.constant 0 : index
    %c0_62 = arith.constant 0 : index
    %146 = vector.load %arg10[%c0_61, %c0_62] : memref<1x5xf32, #tpu.memory_space<vmem>>, vector<1x5xf32>
    %147 = vector.broadcast %146 : vector<1x5xf32> to vector<2x5xf32>
    %148 = arith.addf %145, %147 : vector<2x5xf32>
    %cst_63 = arith.constant dense<0xFF800000> : vector<2xf32>
    %149 = vector.multi_reduction <maximumf>, %148, %cst_63 [1] : vector<2x5xf32> to vector<2xf32>
    %150 = vector.shape_cast %149 : vector<2xf32> to vector<2x1xf32>
    %151 = vector.broadcast %150 : vector<2x1xf32> to vector<2x5xf32>
    %152 = arith.subf %148, %151 : vector<2x5xf32>
    %153 = math.exp %152 : vector<2x5xf32>
    %cst_64 = arith.constant dense<0.000000e+00> : vector<2xf32>
    %154 = vector.multi_reduction <add>, %153, %cst_64 [1] : vector<2x5xf32> to vector<2xf32>
    %155 = vector.shape_cast %154 : vector<2xf32> to vector<2x1xf32>
    %156 = math.log %155 : vector<2x1xf32>
    %157 = vector.broadcast %156 : vector<2x1xf32> to vector<2x5xf32>
    %158 = arith.subf %152, %157 : vector<2x5xf32>
    %c0_65 = arith.constant 0 : index
    %c0_66 = arith.constant 0 : index
    %159 = vector.load %arg11[%c0_65, %c0_66] : memref<2x5xf32, #tpu.memory_space<vmem>>, vector<2x5xf32>
    tpu.vector_store %arg11[%c0_65, %c0_66], %158 {strides = array<i32>} : memref<2x5xf32, #tpu.memory_space<vmem>>, vector<2x5xf32>,
    return
  }
}

</mosaic_0001>

<bundles_post_ra>
// kernel: tpu_custom_call.1
= control target key start
LH: loop header
LB: loop body
LE: loop exit
PB: predicated region body
PF: predicated region fallthrough
CT: control target
= control target key end

     0   :  { %16 = vsyncpa [#allocation3], 0  ;;  %s1463_s0 = inlined_call_operand.vmem [shape: f32[16,6], index: 0, kind: input, shape index: {}]   ;;  %s1464_s1 = inlined_call_operand.vmem [shape: f32[16,16], index: 1, kind: input, shape index: {}]   ;;  %s1465_s2 = inlined_call_operand.vmem [shape: f32[2,16], index: 2, kind: input, shape index: {}]   ;;  %s1466_s3 = inlined_call_operand.vmem [shape: f32[6,96], index: 3, kind: input, shape index: {}]   ;;  %s1467_s4 = inlined_call_operand.hbm [shape: f32[1,96], index: 4, kind: input, shape index: {}]   ;;  %s1468_s5 = inlined_call_operand.vmem [shape: f32[24,96], index: 5, kind: input, shape index: {}]   ;;  %s1469_s6 = inlined_call_operand.hbm [shape: f32[1,96], index: 6, kind: input, shape index: {}]   ;;  %s1470_s7 = inlined_call_operand.vmem [shape: f32[24,16], index: 7, kind: input, shape index: {}]   ;;  %s1471_s8 = inlined_call_operand.vmem [shape: f32[1,16], index: 8, kind: input, shape index: {}]   ;;  %s1472_s9 = inlined_call_operand.vmem [shape: f32[4,5], index: 9, kind: input, shape index: {}]   ;;  %s1473_s10 = inlined_call_operand.vmem [shape: f32[1,5], index: 10, kind: input, shape index: {}]   ;;  %s1474_s11 = inlined_call_operand.hbm [shape: f32[2,5], index: 11, kind: output, shape index: {}]  }
   0x1   :  { %17 = vsyncpa [#allocation6], 0 }
   0x2   :  { %18 = vsyncpa [#allocation4], 0  ;;  %s32_s19 = sshll.u32 %s1467_s4, 4  ;;  %s1185_s20 = smov [#allocation2]   ;;  %s33_s19 = int_to_ptr.hbm [resolvable:$true] %s32_s19 }
   0x3   :  { %s34_s21 = sshll.u32 %s1185_s20, 4  ;;  %s45_s24 = sshll.u32 %s1469_s6, 4  ;;  %s35_s21 = int_to_ptr.vmem [resolvable:$true] %s34_s21  ;;  %s46_s24 = int_to_ptr.hbm [resolvable:$true] %s45_s24 }
   0x4   :  { %37 = dma.hbm_to_vmem [thread:$0]  %s33_s19, 16, %s35_s21, [#allocation3]  }
   0x5   :  { %s1186_s25 = smov [#allocation5]  }
   0x6   :  { %s47_s26 = sshll.u32 %s1186_s25, 4  ;;  %s48_s26 = int_to_ptr.vmem [resolvable:$true] %s47_s26 }
   0x7   :  { %50 = dma.hbm_to_vmem [thread:$0]  %s46_s24, 16, %s48_s26, [#allocation6]  }
   0x8   :  { %1179 = dma.done.wait [#allocation3], 16  }
   0x9   :  { %1180 = vsyncadd [#allocation3], 4294967280 }
   0xa   :  { %1181 = dma.done.wait [#allocation6], 16  }
   0xb   :  { %1182 = vsyncadd [#allocation6], 4294967280  ;;  %vm87_vm0 = vcmask 1045504   ;;  %vm80_vm1 = vcmask 48128   ;;  %v75_v0 = vld [vmem:[%s1466_s3] sm:$0x3f] }
   0xc   :  { %v68_v1 = vld [vmem:[%s1463_s0 + $0x8] sm:$0xff]  ;;  %v67_v2 = vld [vmem:[%s1463_s0] sm:$0xff]  ;;  %1016 = vmatpush.msk.msra.mxu3 %vm87_vm0, %v75_v0  ;;  %976 = vmatpush.msk.msra.mxu0 %vm87_vm0, %v75_v0  ;;  %s1187_s3 = smov 104   ;;  %s1188_s0 = smov 80   ;;  %vm120_vm2 = vcmask 64512   ;;  %vm156_vm4 = vcmask 130048  }
   0xd   :  { %978 = vmatmul.msk.f32.vlgmr.msra.gmra.mxu3 %vm80_vm1, %v68_v1  ;;  %977 = vmatmul.msk.f32.vlgmr.msra.gmra.mxu0 %vm80_vm1, %v67_v2  ;;  %v1059_v3 = vld [vmem:[#allocation2] ss:$0 sm:$0xff]  ;;  %s1189_s12 = smov 96   ;;  %s1190_s13 = smov 88   ;;  %v1193_v19 = vmov -1e+30  }
   0xe   :  { %s1191_s14 = smov 120   ;;  %s1192_s15 = smov 112   ;;  %v1313_v17 = vld [vmem:[%s1464_s1] sm:$0xff]  ;;  %v1321_v22 = vld [vmem:[%s1464_s1 + $0x8] sm:$0xff] }
   0xf   :  { %vm71_vm3 = vcmp.gt.f32.partialorder %v1313_v17, 0.0  ;;  %vm72_vm5 = vcmp.gt.f32.partialorder %v1321_v22, 0.0  ;;  %s1194_s1 = smov 72   ;;  %s1195_s20 = smov 64  }
  0x10   :  { %v1316_v20 = vsel %vm71_vm3, 0.0, %v1193_v19  ;;  %v1326_v26 = vsel %vm72_vm5, 0.0, %v1193_v19  ;;  %s1196_s21 = smov 8   ;;  %s1197_s22 = smov 56  }
  0x11   :  { %s1198_s23 = smov 16  }
  0x8a   :  { %v108_v4 = vpop.f32.mrf.mxu0 }
  0x8b   :  { %v1277_v5 = vadd.f32 %v1059_v3, %v108_v4 }
  0x90   :  { %v111_v6 = vpop.f32.mrf.mxu3 }
  0x91   :  { %v1279_v7 = vadd.f32 %v1059_v3, %v111_v6 }
  0x93   :  { %118 = vrot.lane.b32.xlu0 %v1279_v7, %s1187_s3  ;;  %v1285_v8 = vpack.i.bf16 %v1277_v5, %v1279_v7 }
  0x95   :  { %1035 = vrot.lane.b32.xlu2 %v1285_v8, %s1188_s0 }
  0x9b   :  { %116 = vrot.lane.b32.xlu0 %v1277_v5, %s1187_s3 }
  0x9d   :  { %252 = vrot.lane.b32.xlu2 %v1279_v7, %s1189_s12 }
  0xa3   :  { %384 = vrot.lane.b32.xlu0 %v1279_v7, %s1190_s13 }
  0xa5   :  { %382 = vrot.lane.b32.xlu2 %v1277_v5, %s1190_s13  ;;  %s1199_s13 = smov 124  }
  0xab   :  { %246 = vrot.lane.b32.xlu0 %v1277_v5, %s1191_s14 }
  0xad   :  { %378 = vrot.lane.b32.xlu2 %v1277_v5, %s1192_s15 }
  0xb3   :  { %248 = vrot.lane.b32.xlu0 %v1279_v7, %s1191_s14 }
  0xb5   :  { %380 = vrot.lane.b32.xlu2 %v1279_v7, %s1192_s15 }
  0xef   :  { %v1036_v9 = vpop.permute.xlu2 %1035 }
  0xf0   :  { %v1037_v10 = vunpack.i.l.bf16 %v1036_v9  ;;  %v1038_v11 = vunpack.i.h.bf16 %v1036_v9 }
  0xf2   :  { %207 = vmatpush.msra.mxu2 %v1037_v10 }
  0xf4   :  { %208 = vmatpush.msra.mxu2 %v1038_v11 }
  0xf7   :  { %v253_v12 = vpop.permute.xlu2 %252 }
  0xf8   :  { %985 = vmatpush.xpose.msk.msrb.mxu3 %vm120_vm2, %v253_v12 }
  0xff   :  { %v383_v16 = vpop.permute.xlu2 %382 }
 0x105   :  { %v119_v13 = vpop.permute.xlu0 %118 }
 0x106   :  { %979 = vmatpush.xpose.msk.msra.mxu1 %vm120_vm2, %v119_v13 }
 0x107   :  { %v379_v40 = vpop.permute.xlu2 %378 }
 0x10d   :  { %v117_v14 = vpop.permute.xlu0 %116 }
 0x10e   :  { %980 = vmatpush.xpose.msk.msra.mxu1 %vm120_vm2, %v117_v14 }
 0x10f   :  { %v381_v43 = vpop.permute.xlu2 %380 }
 0x111   :  { %981 = vmatmul.msk.f32.vlgmr.msra.gmra.mxu1 %vm120_vm2, %v1277_v5 }
 0x115   :  { %v385_v15 = vpop.permute.xlu0 %384 }
 0x116   :  { %991 = vmatpush.xpose.msk.msrb.mxu2 %vm120_vm2, %v385_v15 }
 0x119   :  { %982 = vmatmul.msk.f32.gmra.mxu1 %vm120_vm2, %v1279_v7 }
 0x11a   :  { %992 = vmatpush.xpose.msk.msrb.mxu2 %vm120_vm2, %v383_v16 }
 0x11d   :  { %v247_v42 = vpop.permute.xlu0 %246 }
 0x125   :  { %v249_v44 = vpop.permute.xlu0 %248 }
 0x18e   :  { %v146_v18 = vpop.f32.mrf.mxu1 }
 0x18f   :  { %v152_v21 = vmul.f32 0.35355338, %v146_v18 }
 0x191   :  { %v154_v23 = vadd.f32 %v152_v21, %v1316_v20 }
 0x193   :  { %v157_v24 = vsel %vm156_vm4, %v154_v23, -inf }
 0x194   :  { %158 = vmax.xlane.f32.xlu1 %v157_v24 }
 0x196   :  { %v149_v25 = vpop.f32.mrf.mxu1 }
 0x197   :  { %v153_v27 = vmul.f32 0.35355338, %v149_v25 }
 0x199   :  { %v155_v28 = vadd.f32 %v153_v27, %v1326_v26 }
 0x19b   :  { %v160_v29 = vsel %vm156_vm4, %v155_v28, -inf }
 0x19c   :  { %161 = vmax.xlane.f32.xlu1 %v160_v29 }
 0x1b5   :  { %250 = vrot.lane.b32.xlu1 %v1277_v5, %s1189_s12 }
 0x207   :  { %v159_v30 = vpop.xlane.xlu1 %158 }
 0x208   :  { %v163_v31 = vsub.f32 %v154_v23, %v159_v30 }
 0x20a   :  { %v165_v32 = vmul.f32 1.442695, %v163_v31 }
 0x20c   :  { %1063 = vpow2.f32 %v165_v32 }
 0x20f   :  { %v162_v33 = vpop.xlane.xlu1 %161 }
 0x210   :  { %v164_v34 = vsub.f32 %v155_v28, %v162_v33 }
 0x212   :  { %v1064_v35 = vpop.eup %1063  ;;  %v167_v36 = vmul.f32 1.442695, %v164_v34 }
 0x213   :  { %v169_v37 = vmul.f32 %v1064_v35, %v1313_v17 }
 0x214   :  { %1065 = vpow2.f32 %v167_v36 }
 0x215   :  { %983 = vmatmul.msk.f32.vlgmr.msra.gmra.mxu2 %vm156_vm4, %v169_v37  ;;  %v171_v63 = vsel %vm156_vm4, %v169_v37, 0.0 }
 0x21a   :  { %v1066_v38 = vpop.eup %1065 }
 0x21b   :  { %v1335_v39 = vmul.f32 %v1066_v38, %v1321_v22 }
 0x21d   :  { %984 = vmatmul.msk.f32.gmra.mxu2 %vm156_vm4, %v1335_v39  ;;  %v174_v25 = vsel %vm156_vm4, %v1335_v39, 0.0 }
 0x225   :  { %993 = vmatmul.msk.f32.vlgmr.msrb.gmra.mxu2 %vm120_vm2, %v379_v40 }
 0x227   :  { %v251_v41 = vpop.permute.xlu1 %250 }
 0x228   :  { %986 = vmatpush.xpose.msk.msrb.mxu3 %vm120_vm2, %v251_v41 }
 0x22b   :  { %987 = vmatmul.msk.f32.vlgmr.msrb.gmra.mxu3 %vm120_vm2, %v247_v42 }
 0x22d   :  { %994 = vmatmul.msk.f32.gmra.mxu2 %vm120_vm2, %v381_v43 }
 0x233   :  { %988 = vmatmul.msk.f32.gmra.mxu3 %vm120_vm2, %v249_v44 }
 0x298   :  { %v1344_v45 = vpop.f32.mrf.mxu2 }
 0x2a0   :  { %v1346_v46 = vpop.f32.mrf.mxu2 }
 0x2a8   :  { %v411_v47 = vpop.f32.mrf.mxu2 }
 0x2a9   :  { %v417_v48 = vmul.f32 0.35355338, %v411_v47 }
 0x2ab   :  { %v419_v49 = vadd.f32 %v417_v48, %v1316_v20 }
 0x2ad   :  { %v421_v50 = vsel %vm156_vm4, %v419_v49, -inf }
 0x2ae   :  { %422 = vmax.xlane.f32.xlu2 %v421_v50  ;;  %v279_v51 = vpop.f32.mrf.mxu3 }
 0x2af   :  { %v285_v52 = vmul.f32 0.35355338, %v279_v51 }
 0x2b0   :  { %v414_v53 = vpop.f32.mrf.mxu2 }
 0x2b1   :  { %v418_v54 = vmul.f32 0.35355338, %v414_v53  ;;  %v287_v55 = vadd.f32 %v285_v52, %v1316_v20 }
 0x2b3   :  { %v289_v56 = vsel %vm156_vm4, %v287_v55, -inf  ;;  %v420_v57 = vadd.f32 %v418_v54, %v1326_v26 }
 0x2b4   :  { %290 = vmax.xlane.f32.xlu0 %v289_v56 }
 0x2b5   :  { %v424_v58 = vsel %vm156_vm4, %v420_v57, -inf }
 0x2b6   :  { %425 = vmax.xlane.f32.xlu2 %v424_v58  ;;  %v282_v59 = vpop.f32.mrf.mxu3 }
 0x2b7   :  { %v286_v60 = vmul.f32 0.35355338, %v282_v59 }
 0x2b9   :  { %v288_v61 = vadd.f32 %v286_v60, %v1326_v26 }
 0x2bb   :  { %v292_v62 = vsel %vm156_vm4, %v288_v61, -inf }
 0x2bc   :  { %293 = vmax.xlane.f32.xlu1 %v292_v62 }
 0x2c8   :  { %1040 = vrot.lane.b32.xlu0 %v1285_v8, %s1194_s1 }
 0x2d5   :  { %1045 = vrot.lane.b32.xlu1 %v1285_v8, %s1195_s20  ;;  %s965_s20 = sshll.u32 %s1474_s11, 4  ;;  %s966_s20 = int_to_ptr.hbm [resolvable:$true] %s965_s20 }
 0x2ff   :  { %172 = vadd.xlane.f32.xlu1 %v171_v63 }
 0x321   :  { %v423_v3 = vpop.xlane.xlu2 %422 }
 0x322   :  { %v427_v6 = vsub.f32 %v419_v49, %v423_v3 }
 0x324   :  { %v429_v13 = vmul.f32 1.442695, %v427_v6 }
 0x327   :  { %v291_v0 = vpop.xlane.xlu0 %290 }
 0x328   :  { %v295_v1 = vsub.f32 %v287_v55, %v291_v0 }
 0x329   :  { %v426_v14 = vpop.xlane.xlu2 %425 }
 0x32a   :  { %v297_v2 = vmul.f32 1.442695, %v295_v1  ;;  %v428_v15 = vsub.f32 %v420_v57, %v426_v14 }
 0x32c   :  { %1067 = vpow2.f32 %v297_v2  ;;  %v431_v23 = vmul.f32 1.442695, %v428_v15 }
 0x32f   :  { %v294_v4 = vpop.xlane.xlu1 %293 }
 0x330   :  { %v296_v9 = vsub.f32 %v288_v61, %v294_v4 }
 0x332   :  { %v1068_v10 = vpop.eup %1067  ;;  %v299_v11 = vmul.f32 1.442695, %v296_v9 }
 0x333   :  { %v301_v12 = vmul.f32 %v1068_v10, %v1313_v17 }
 0x334   :  { %1069 = vpow2.f32 %v299_v11 }
 0x335   :  { %v303_v8 = vsel %vm156_vm4, %v301_v12, 0.0  ;;  %1071 = vpow2.f32 %v429_v13 }
 0x336   :  { %304 = vadd.xlane.f32.xlu2 %v303_v8  ;;  %1073 = vpow2.f32 %v431_v23 }
 0x33a   :  { %v1070_v16 = vpop.eup %1069  ;;  %v1041_v18 = vpop.permute.xlu0 %1040 }
 0x33b   :  { %v1042_v19 = vunpack.i.l.bf16 %v1041_v18  ;;  %v302_v21 = vmul.f32 %v1070_v16, %v1321_v22  ;;  %v1043_v27 = vunpack.i.h.bf16 %v1041_v18  ;;  %v1072_v28 = vpop.eup %1071 }
 0x33c   :  { %v433_v29 = vmul.f32 %v1072_v28, %v1313_v17  ;;  %v1074_v31 = vpop.eup %1073 }
 0x33d   :  { %339 = vmatpush.msrb.mxu0 %v1042_v19  ;;  %v306_v24 = vsel %vm156_vm4, %v302_v21, 0.0  ;;  %v434_v34 = vmul.f32 %v1074_v31, %v1321_v22 }
 0x33e   :  { %307 = vadd.xlane.f32.xlu0 %v306_v24  ;;  %175 = vadd.xlane.f32.xlu2 %v174_v25  ;;  %v435_v30 = vsel %vm156_vm4, %v433_v29, 0.0 }
 0x33f   :  { %340 = vmatpush.msrb.mxu0 %v1043_v27  ;;  %v438_v36 = vsel %vm156_vm4, %v434_v34, 0.0 }
 0x340   :  { %989 = vmatmul.msk.f32.vlgmr.msrb.gmra.mxu0 %vm156_vm4, %v301_v12 }
 0x346   :  { %436 = vadd.xlane.f32.xlu2 %v435_v30 }
 0x347   :  { %v1046_v32 = vpop.permute.xlu1 %1045 }
 0x348   :  { %990 = vmatmul.msk.f32.gmra.mxu0 %vm156_vm4, %v302_v21  ;;  %v1047_v33 = vunpack.i.l.bf16 %v1046_v32  ;;  %v1048_v35 = vunpack.i.h.bf16 %v1046_v32 }
 0x34a   :  { %471 = vmatpush.msrb.mxu1 %v1047_v33 }
 0x34c   :  { %472 = vmatpush.msrb.mxu1 %v1048_v35 }
 0x34d   :  { %995 = vmatmul.msk.f32.vlgmr.msrb.gmra.mxu1 %vm156_vm4, %v433_v29 }
 0x34e   :  { %439 = vadd.xlane.f32.xlu2 %v438_v36 }
 0x355   :  { %996 = vmatmul.msk.f32.gmra.mxu1 %vm156_vm4, %v434_v34 }
 0x3a9   :  { %v305_v37 = vpop.xlane.xlu2 %304 }
 0x3aa   :  { %vm309_vm6 = vcmp.gt.f32.partialorder %v305_v37, 0.0 }
 0x3ab   :  { %v311_v38 = vsel %vm309_vm6, %v305_v37, 1.0  ;;  %v173_v37 = vpop.xlane.xlu1 %172 }
 0x3ac   :  { %1075 = vrcp.f32 %v311_v38  ;;  %v359_v47 = vand.u32 2147483648, %v311_v38  ;;  %v357_v49 = vand.u32 2147483647, %v311_v38  ;;  %vm353_vm9 = vweird.f32 %v311_v38 }
 0x3ae   :  { %v360_v52 = vor.u32 1.1754944e-38, %v359_v47  ;;  %vm358_vm12 = vcmp.eq.f32.partialorder %v357_v49, 8.507059e+37 }
 0x3b1   :  { %v1373_v39 = vpop.xlane.xlu2 %175  ;;  %v308_v40 = vpop.xlane.xlu0 %307 }
 0x3b2   :  { %v1076_v41 = vpop.eup %1075  ;;  %vm310_vm7 = vcmp.gt.f32.partialorder %v308_v40, 0.0 }
 0x3b3   :  { %v349_v42 = vmul.f32 %v1076_v41, %v311_v38  ;;  %v312_v43 = vsel %vm310_vm7, %v308_v40, 1.0  ;;  %vm354_vm8 = vweird.f32 %v1076_v41  ;;  %v540_v38 = vld [vmem:[%s1468_s5 + $0x10] sm:$0xff] }
 0x3b4   :  { %1077 = vrcp.f32 %v312_v43  ;;  %vm355_vm11 = vmor %vm353_vm9, %vm354_vm8  ;;  %v374_v61 = vand.u32 2147483648, %v312_v43  ;;  %v372_v63 = vand.u32 2147483647, %v312_v43  ;;  %vm368_vm15 = vweird.f32 %v312_v43  ;;  %565 = vmatpush.msra.mxu3 %v540_v38 }
 0x3b5   :  { %v350_v44 = vsub.f32 1.0, %v349_v42  ;;  %v539_v42 = vld [vmem:[%s1468_s5 + $0x8] sm:$0xff] }
 0x3b6   :  { %v375_v6 = vor.u32 1.1754944e-38, %v374_v61  ;;  %vm373_vm1 = vcmp.eq.f32.partialorder %v372_v63, 8.507059e+37  ;;  %566 = vmatpush.msra.mxu3 %v539_v42 }
 0x3b7   :  { %v351_v48 = vmul.f32 %v1076_v41, %v350_v44 }
 0x3b9   :  { %v437_v50 = vpop.xlane.xlu2 %436  ;;  %v352_v51 = vadd.f32 %v1076_v41, %v351_v48 }
 0x3ba   :  { %vm441_vm10 = vcmp.gt.f32.partialorder %v437_v50, 0.0  ;;  %v1078_v53 = vpop.eup %1077 }
 0x3bb   :  { %v443_v54 = vsel %vm441_vm10, %v437_v50, 1.0  ;;  %v356_v55 = vsel %vm355_vm11, %v1076_v41, %v352_v51  ;;  %v364_v56 = vmul.f32 %v1078_v53, %v312_v43  ;;  %vm369_vm13 = vweird.f32 %v1078_v53 }
 0x3bc   :  { %1079 = vrcp.f32 %v443_v54  ;;  %v361_v57 = vsel %vm358_vm12, %v360_v52, %v356_v55  ;;  %vm370_vm0 = vmor %vm368_vm15, %vm369_vm13  ;;  %v491_v14 = vand.u32 2147483648, %v443_v54  ;;  %v489_v15 = vand.u32 2147483647, %v443_v54 }
 0x3bd   :  { %v342_v58 = vpop.f32.mrf.mxu0  ;;  %v365_v59 = vsub.f32 1.0, %v364_v56  ;;  %vm485_vm5 = vweird.f32 %v443_v54  ;;  %vm177_vm12 = vcmp.gt.f32.partialorder %v173_v37, 0.0  ;;  %vm178_vm13 = vcmp.gt.f32.partialorder %v1373_v39, 0.0 }
 0x3be   :  { %v362_v60 = vmul.f32 %v361_v57, %v342_v58  ;;  %v492_v21 = vor.u32 1.1754944e-38, %v491_v14  ;;  %vm490_vm7 = vcmp.eq.f32.partialorder %v489_v15, 8.507059e+37  ;;  %v179_v40 = vsel %vm177_vm12, %v173_v37, 1.0  ;;  %v1060_v15 = vld [vmem:[#allocation5] ss:$0 sm:$0xff] }
 0x3bf   :  { %v366_v62 = vmul.f32 %v1078_v53, %v365_v59  ;;  %v180_v41 = vsel %vm178_vm13, %v1373_v39, 1.0  ;;  %vm221_vm15 = vweird.f32 %v179_v40  ;;  %v225_v55 = vand.u32 2147483647, %v179_v40 }
 0x3c0   :  { %512 = vrot.lane.b32.xlu2 %v362_v60, %s1196_s21  ;;  %v242_v60 = vand.u32 2147483648, %v180_v41  ;;  %v240_v61 = vand.u32 2147483647, %v180_v41 }
 0x3c1   :  { %v440_v0 = vpop.xlane.xlu2 %439  ;;  %v367_v2 = vadd.f32 %v1078_v53, %v366_v62 }
 0x3c2   :  { %v1080_v1 = vpop.eup %1079  ;;  %vm442_vm14 = vcmp.gt.f32.partialorder %v440_v0, 0.0 }
 0x3c3   :  { %v481_v3 = vmul.f32 %v1080_v1, %v443_v54  ;;  %v444_v4 = vsel %vm442_vm14, %v440_v0, 1.0  ;;  %v371_v9 = vsel %vm370_vm0, %v1078_v53, %v367_v2  ;;  %vm486_vm3 = vweird.f32 %v1080_v1 }
 0x3c4   :  { %1081 = vrcp.f32 %v444_v4  ;;  %v376_v12 = vsel %vm373_vm1, %v375_v6, %v371_v9  ;;  %vm487_vm6 = vmor %vm485_vm5, %vm486_vm3  ;;  %v506_v29 = vand.u32 2147483648, %v444_v4  ;;  %v504_v31 = vand.u32 2147483647, %v444_v4 }
 0x3c5   :  { %v482_v10 = vsub.f32 1.0, %v481_v3  ;;  %v345_v11 = vpop.f32.mrf.mxu0  ;;  %vm500_vm9 = vweird.f32 %v444_v4  ;;  %1083 = vrcp.f32 %v179_v40  ;;  %v227_v54 = vand.u32 2147483648, %v179_v40 }
 0x3c6   :  { %v377_v13 = vmul.f32 %v376_v12, %v345_v11  ;;  %v507_v32 = vor.u32 1.1754944e-38, %v506_v29  ;;  %vm505_vm11 = vcmp.eq.f32.partialorder %v504_v31, 8.507059e+37  ;;  %1085 = vrcp.f32 %v180_v41 }
 0x3c7   :  { %v483_v8 = vmul.f32 %v1080_v1, %v482_v10  ;;  %v228_v59 = vor.u32 1.1754944e-38, %v227_v54  ;;  %vm226_vm3 = vcmp.eq.f32.partialorder %v225_v55, 8.507059e+37  ;;  %vm236_vm5 = vweird.f32 %v180_v41 }
 0x3c8   :  { %530 = vrot.lane.b32.xlu2 %v1277_v5, %s1197_s22  ;;  %514 = vrot.lane.b32.xlu1 %v377_v13, %s1196_s21  ;;  %v243_v0 = vor.u32 1.1754944e-38, %v242_v60 }
 0x3c9   :  { %v484_v16 = vadd.f32 %v1080_v1, %v483_v8 }
 0x3ca   :  { %v1082_v18 = vpop.eup %1081  ;;  %v474_v19 = vpop.f32.mrf.mxu1 }
 0x3cb   :  { %v496_v23 = vmul.f32 %v1082_v18, %v444_v4  ;;  %v488_v24 = vsel %vm487_vm6, %v1080_v1, %v484_v16  ;;  %vm501_vm8 = vweird.f32 %v1082_v18  ;;  %v1084_v43 = vpop.eup %1083 }
 0x3cc   :  { %v493_v25 = vsel %vm490_vm7, %v492_v21, %v488_v24  ;;  %vm502_vm10 = vmor %vm500_vm9, %vm501_vm8  ;;  %v217_v44 = vmul.f32 %v1084_v43, %v179_v40  ;;  %v1086_v47 = vpop.eup %1085  ;;  %vm222_vm14 = vweird.f32 %v1084_v43  ;;  %vm241_vm7 = vcmp.eq.f32.partialorder %v240_v61, 8.507059e+37 }
 0x3cd   :  { %v497_v27 = vsub.f32 1.0, %v496_v23  ;;  %v494_v28 = vmul.f32 %v493_v25, %v474_v19  ;;  %v232_v49 = vmul.f32 %v1086_v47, %v180_v41  ;;  %vm223_vm0 = vmor %vm221_vm15, %vm222_vm14  ;;  %vm237_vm1 = vweird.f32 %v1086_v47 }
 0x3ce   :  { %v218_v48 = vsub.f32 1.0, %v217_v44  ;;  %vm238_vm6 = vmor %vm236_vm5, %vm237_vm1  ;;  %vm545_vm8 = vcmask 195584  }
 0x3cf   :  { %520 = vrot.lane.b32.xlu0 %v494_v28, %s1198_s23  ;;  %v498_v30 = vmul.f32 %v1082_v18, %v497_v27  ;;  %v233_v52 = vsub.f32 1.0, %v232_v49 }
 0x3d0   :  { %v219_v51 = vmul.f32 %v1084_v43, %v218_v48 }
 0x3d1   :  { %v499_v5 = vadd.f32 %v1082_v18, %v498_v30  ;;  %v234_v53 = vmul.f32 %v1086_v47, %v233_v52  ;;  %v713_v52 = vld [vmem:[%s1470_s7] sm:$0xff] }
 0x3d2   :  { %v477_v34 = vpop.f32.mrf.mxu1  ;;  %v220_v39 = vadd.f32 %v1084_v43, %v219_v51  ;;  %v714_v51 = vld [vmem:[%s1470_s7 + $0x8] sm:$0xff] }
 0x3d3   :  { %v503_v33 = vsel %vm502_vm10, %v1082_v18, %v499_v5  ;;  %v235_v57 = vadd.f32 %v1086_v47, %v234_v53 }
 0x3d4   :  { %v508_v35 = vsel %vm505_vm11, %v507_v32, %v503_v33  ;;  %v224_v58 = vsel %vm223_vm0, %v1084_v43, %v220_v39 }
 0x3d5   :  { %v509_v36 = vmul.f32 %v508_v35, %v477_v34  ;;  %v229_v62 = vsel %vm226_vm3, %v228_v59, %v224_v58  ;;  %v239_v63 = vsel %vm238_vm6, %v1086_v47, %v235_v57  ;;  %vm755_vm3 = vcmask 31744  }
 0x3d6   :  { %v230_v1 = vmul.f32 %v229_v62, %v1344_v45  ;;  %v244_v3 = vsel %vm241_vm7, %v243_v0, %v239_v63  ;;  %vm920_vm6 = vcmask 1043456  }
 0x3d7   :  { %522 = vrot.lane.b32.xlu2 %v509_v36, %s1198_s23  ;;  %v245_v11 = vmul.f32 %v244_v3, %v1346_v46 }
 0x3df   :  { %532 = vrot.lane.b32.xlu2 %v1279_v7, %s1197_s22  ;;  %v538_v7 = vld [vmem:[%s1468_s5] sm:$0xff] }
 0x3e0   :  { %567 = vmatpush.msra.mxu3 %v538_v7 }
 0x41a   :  { %v513_v50 = vpop.permute.xlu2 %512 }
 0x41b   :  { %v526_v4 = vsel %vm120_vm2, %v230_v1, %v513_v50  ;;  %v715_v50 = vld [vmem:[%s1470_s7 + $0x10] sm:$0xff] }
 0x41c   :  { %739 = vmatpush.msra.mxu1 %v715_v50 }
 0x41e   :  { %740 = vmatpush.msra.mxu1 %v714_v51 }
 0x420   :  { %741 = vmatpush.msra.mxu1 %v713_v52 }
 0x422   :  { %v531_v56 = vpop.permute.xlu2 %530 }
 0x431   :  { %v523_v2 = vpop.permute.xlu2 %522 }
 0x439   :  { %v533_v8 = vpop.permute.xlu2 %532 }
 0x43a   :  { %v515_v9 = vpop.permute.xlu1 %514 }
 0x43b   :  { %v527_v13 = vsel %vm120_vm2, %v245_v11, %v515_v9 }
 0x43c   :  { %v529_v14 = vsel %vm156_vm4, %v527_v13, %v523_v2 }
 0x43d   :  { %v537_v45 = vadd.f32 %v533_v8, %v529_v14 }
 0x441   :  { %v521_v6 = vpop.permute.xlu0 %520 }
 0x442   :  { %v528_v10 = vsel %vm156_vm4, %v526_v4, %v521_v6 }
 0x443   :  { %v536_v12 = vadd.f32 %v531_v56, %v528_v10 }
 0x445   :  { %997 = vmatmul.msk.f32.vlgmr.msra.gmra.mxu3 %vm545_vm8, %v536_v12 }
 0x44d   :  { %998 = vmatmul.msk.f32.gmra.mxu3 %vm545_vm8, %v537_v45 }
 0x4c8   :  { %v569_v16 = vpop.f32.mrf.mxu3 }
 0x4c9   :  { %v570_v18 = vadd.f32 %v1060_v15, %v569_v16 }
 0x4cb   :  { %577 = vrot.lane.b32.xlu2 %v570_v18, %s1187_s3 }
 0x4d0   :  { %v572_v19 = vpop.f32.mrf.mxu3 }
 0x4d1   :  { %v573_v21 = vadd.f32 %v1060_v15, %v572_v19 }
 0x4d3   :  { %579 = vrot.lane.b32.xlu0 %v573_v21, %s1187_s3  ;;  %v1049_v46 = vpack.i.bf16 %v570_v18, %v573_v21 }
 0x4d5   :  { %1050 = vrot.lane.b32.xlu2 %v1049_v46, %s1188_s0 }
 0x525   :  { %v578_v23 = vpop.permute.xlu2 %577 }
 0x52f   :  { %v1051_v24 = vpop.permute.xlu2 %1050 }
 0x530   :  { %v1052_v25 = vunpack.i.l.bf16 %v1051_v24  ;;  %v1053_v27 = vunpack.i.h.bf16 %v1051_v24 }
 0x532   :  { %666 = vmatpush.msra.mxu2 %v1052_v25 }
 0x534   :  { %667 = vmatpush.msra.mxu2 %v1053_v27 }
 0x545   :  { %v580_v28 = vpop.permute.xlu0 %579 }
 0x546   :  { %999 = vmatpush.xpose.msk.msra.mxu0 %vm545_vm8, %v580_v28 }
 0x54a   :  { %1000 = vmatpush.xpose.msk.msra.mxu0 %vm545_vm8, %v578_v23  ;;  %v1061_v23 = vld [vmem:[%s1471_s8] ss:$0 sm:$0xff]  ;;  %s1200_s8 = smov 116  }
 0x54d   :  { %1001 = vmatmul.msk.f32.vlgmr.msra.gmra.mxu0 %vm545_vm8, %v570_v18 }
 0x555   :  { %1002 = vmatmul.msk.f32.gmra.mxu0 %vm545_vm8, %v573_v21 }
 0x5ca   :  { %v606_v29 = vpop.f32.mrf.mxu0 }
 0x5cb   :  { %v612_v30 = vmul.f32 0.20412415, %v606_v29 }
 0x5cd   :  { %v614_v31 = vadd.f32 %v612_v30, %v1316_v20 }
 0x5cf   :  { %v616_v5 = vsel %vm156_vm4, %v614_v31, -inf }
 0x5d0   :  { %617 = vmax.xlane.f32.xlu0 %v616_v5 }
 0x5d2   :  { %v609_v32 = vpop.f32.mrf.mxu0 }
 0x5d3   :  { %v613_v33 = vmul.f32 0.20412415, %v609_v32 }
 0x5d5   :  { %v615_v34 = vadd.f32 %v613_v33, %v1326_v26 }
 0x5d7   :  { %v619_v35 = vsel %vm156_vm4, %v615_v34, -inf }
 0x5d8   :  { %620 = vmax.xlane.f32.xlu1 %v619_v35 }
 0x5f1   :  { %705 = vrot.lane.b32.xlu1 %v570_v18, %s1197_s22 }
 0x643   :  { %v618_v36 = vpop.xlane.xlu0 %617 }
 0x644   :  { %v622_v37 = vsub.f32 %v614_v31, %v618_v36 }
 0x646   :  { %v624_v38 = vmul.f32 1.442695, %v622_v37 }
 0x648   :  { %1087 = vpow2.f32 %v624_v38 }
 0x64b   :  { %v621_v40 = vpop.xlane.xlu1 %620 }
 0x64c   :  { %v623_v41 = vsub.f32 %v615_v34, %v621_v40 }
 0x64e   :  { %v1088_v42 = vpop.eup %1087  ;;  %v626_v7 = vmul.f32 1.442695, %v623_v41 }
 0x64f   :  { %v628_v43 = vmul.f32 %v1088_v42, %v1313_v17 }
 0x650   :  { %1089 = vpow2.f32 %v626_v7 }
 0x651   :  { %1003 = vmatmul.msk.f32.vlgmr.msra.gmra.mxu2 %vm156_vm4, %v628_v43  ;;  %v630_v44 = vsel %vm156_vm4, %v628_v43, 0.0 }
 0x652   :  { %631 = vadd.xlane.f32.xlu2 %v630_v44 }
 0x656   :  { %v1090_v47 = vpop.eup %1089 }
 0x657   :  { %v629_v48 = vmul.f32 %v1090_v47, %v1321_v22 }
 0x659   :  { %1004 = vmatmul.msk.f32.gmra.mxu2 %vm156_vm4, %v629_v48  ;;  %v633_v49 = vsel %vm156_vm4, %v629_v48, 0.0 }
 0x65a   :  { %634 = vadd.xlane.f32.xlu0 %v633_v49 }
 0x663   :  { %v706_v10 = vpop.permute.xlu1 %705 }
 0x66e   :  { %707 = vrot.lane.b32.xlu0 %v573_v21, %s1197_s22 }
 0x6c5   :  { %v632_v39 = vpop.xlane.xlu2 %631 }
 0x6c6   :  { %vm636_vm2 = vcmp.gt.f32.partialorder %v632_v39, 0.0 }
 0x6c7   :  { %v638_v53 = vsel %vm636_vm2, %v632_v39, 1.0 }
 0x6c8   :  { %1091 = vrcp.f32 %v638_v53  ;;  %v686_v59 = vand.u32 2147483648, %v638_v53  ;;  %v684_v61 = vand.u32 2147483647, %v638_v53  ;;  %vm680_vm11 = vweird.f32 %v638_v53 }
 0x6ca   :  { %v687_v1 = vor.u32 1.1754944e-38, %v686_v59  ;;  %vm685_vm13 = vcmp.eq.f32.partialorder %v684_v61, 8.507059e+37 }
 0x6cd   :  { %v635_v54 = vpop.xlane.xlu0 %634 }
 0x6ce   :  { %v1092_v55 = vpop.eup %1091  ;;  %vm637_vm9 = vcmp.gt.f32.partialorder %v635_v54, 0.0 }
 0x6cf   :  { %v676_v56 = vmul.f32 %v1092_v55, %v638_v53  ;;  %v639_v57 = vsel %vm637_vm9, %v635_v54, 1.0  ;;  %vm681_vm10 = vweird.f32 %v1092_v55 }
 0x6d0   :  { %1093 = vrcp.f32 %v639_v57  ;;  %vm682_vm12 = vmor %vm680_vm11, %vm681_vm10  ;;  %v701_v11 = vand.u32 2147483648, %v639_v57  ;;  %v699_v14 = vand.u32 2147483647, %v639_v57  ;;  %vm695_vm15 = vweird.f32 %v639_v57 }
 0x6d1   :  { %v677_v58 = vsub.f32 1.0, %v676_v56 }
 0x6d2   :  { %v702_v45 = vor.u32 1.1754944e-38, %v701_v11  ;;  %vm700_vm1 = vcmp.eq.f32.partialorder %v699_v14, 8.507059e+37 }
 0x6d3   :  { %v678_v60 = vmul.f32 %v1092_v55, %v677_v58 }
 0x6d4   :  { %v669_v0 = vpop.f32.mrf.mxu2 }
 0x6d5   :  { %v679_v62 = vadd.f32 %v1092_v55, %v678_v60 }
 0x6d6   :  { %v1094_v63 = vpop.eup %1093 }
 0x6d7   :  { %v691_v2 = vmul.f32 %v1094_v63, %v639_v57  ;;  %v683_v3 = vsel %vm682_vm12, %v1092_v55, %v679_v62  ;;  %vm696_vm14 = vweird.f32 %v1094_v63 }
 0x6d8   :  { %v688_v4 = vsel %vm685_vm13, %v687_v1, %v683_v3  ;;  %vm697_vm0 = vmor %vm695_vm15, %vm696_vm14  ;;  %vm944_vm15 = vcmask 33792  }
 0x6d9   :  { %v692_v6 = vsub.f32 1.0, %v691_v2  ;;  %v689_v9 = vmul.f32 %v688_v4, %v669_v0 }
 0x6db   :  { %v711_v12 = vadd.f32 %v706_v10, %v689_v9  ;;  %v693_v13 = vmul.f32 %v1094_v63, %v692_v6 }
 0x6dc   :  { %v672_v16 = vpop.f32.mrf.mxu2 }
 0x6dd   :  { %v694_v8 = vadd.f32 %v1094_v63, %v693_v13  ;;  %1005 = vmatmul.msk.f32.vlgmr.msra.gmra.mxu1 %vm545_vm8, %v711_v12 }
 0x6df   :  { %v698_v15 = vsel %vm697_vm0, %v1094_v63, %v694_v8 }
 0x6e0   :  { %v703_v18 = vsel %vm700_vm1, %v702_v45, %v698_v15  ;;  %v708_v21 = vpop.permute.xlu0 %707 }
 0x6e1   :  { %v704_v19 = vmul.f32 %v703_v18, %v672_v16 }
 0x6e3   :  { %v712_v46 = vadd.f32 %v708_v21, %v704_v19 }
 0x6e5   :  { %1006 = vmatmul.msk.f32.gmra.mxu1 %vm545_vm8, %v712_v46 }
 0x75a   :  { %v743_v24 = vpop.f32.mrf.mxu1 }
 0x75b   :  { %v744_v25 = vadd.f32 %v1061_v23, %v743_v24 }
 0x75d   :  { %751 = vrot.lane.b32.xlu0 %v744_v25, %s1199_s13 }
 0x762   :  { %v746_v27 = vpop.f32.mrf.mxu1 }
 0x763   :  { %v747_v28 = vadd.f32 %v1061_v23, %v746_v27  ;;  %v888_v23 = vld [vmem:[%s1465_s2] sm:$0x3]  ;;  %s1201_s2 = smov [#allocation7]  }
 0x764   :  { %s963_s19 = sshll.u32 %s1201_s2, 4  ;;  %s964_s19 = int_to_ptr.vmem [resolvable:$true] %s963_s19 }
 0x765   :  { %753 = vrot.lane.b32.xlu2 %v747_v28, %s1199_s13  ;;  %v1054_v29 = vpack.i.bf16 %v744_v25, %v747_v28 }
 0x76d   :  { %1055 = vrot.lane.b32.xlu2 %v1054_v29, %s1191_s14 }
 0x7bf   :  { %v754_v30 = vpop.permute.xlu2 %753 }
 0x7c0   :  { %1007 = vmatpush.xpose.msk.msrb.mxu3 %vm755_vm3, %v754_v30 }
 0x7c7   :  { %v1056_v31 = vpop.permute.xlu2 %1055 }
 0x7c8   :  { %v1057_v5 = vunpack.i.l.bf16 %v1056_v31  ;;  %v1058_v32 = vunpack.i.h.bf16 %v1056_v31 }
 0x7ca   :  { %841 = vmatpush.msrb.mxu0 %v1057_v5 }
 0x7cc   :  { %842 = vmatpush.msrb.mxu0 %v1058_v32 }
 0x7cf   :  { %v752_v33 = vpop.permute.xlu0 %751 }
 0x7d0   :  { %1008 = vmatpush.xpose.msk.msrb.mxu3 %vm755_vm3, %v752_v33 }
 0x7d3   :  { %1009 = vmatmul.msk.f32.vlgmr.msrb.gmra.mxu3 %vm755_vm3, %v744_v25 }
 0x7db   :  { %1010 = vmatmul.msk.f32.gmra.mxu3 %vm755_vm3, %v747_v28 }
 0x856   :  { %v781_v34 = vpop.f32.mrf.mxu3 }
 0x857   :  { %v787_v35 = vmul.f32 0.5, %v781_v34 }
 0x859   :  { %v789_v36 = vadd.f32 %v787_v35, %v1316_v20 }
 0x85b   :  { %v791_v37 = vsel %vm156_vm4, %v789_v36, -inf }
 0x85c   :  { %792 = vmax.xlane.f32.xlu1 %v791_v37 }
 0x85e   :  { %v784_v38 = vpop.f32.mrf.mxu3 }
 0x85f   :  { %v788_v40 = vmul.f32 0.5, %v784_v38 }
 0x861   :  { %v790_v41 = vadd.f32 %v788_v40, %v1326_v26 }
 0x863   :  { %v794_v42 = vsel %vm156_vm4, %v790_v41, -inf }
 0x864   :  { %795 = vmax.xlane.f32.xlu0 %v794_v42 }
 0x878   :  { %882 = vrot.lane.b32.xlu0 %v747_v28, %s1200_s8 }
 0x8cf   :  { %v793_v7 = vpop.xlane.xlu1 %792 }
 0x8d0   :  { %v797_v43 = vsub.f32 %v789_v36, %v793_v7 }
 0x8d2   :  { %v799_v44 = vmul.f32 1.442695, %v797_v43 }
 0x8d4   :  { %1095 = vpow2.f32 %v799_v44 }
 0x8d7   :  { %v796_v47 = vpop.xlane.xlu0 %795 }
 0x8d8   :  { %v798_v48 = vsub.f32 %v790_v41, %v796_v47 }
 0x8da   :  { %v1096_v49 = vpop.eup %1095  ;;  %v801_v20 = vmul.f32 1.442695, %v798_v48 }
 0x8db   :  { %v803_v50 = vmul.f32 %v1096_v49, %v1313_v17  ;;  %v912_v17 = vld [vmem:[%s1472_s9] sm:$0xf] }
 0x8dc   :  { %1097 = vpow2.f32 %v801_v20  ;;  %1014 = vmatpush.msk.msrb.mxu1 %vm920_vm6, %v912_v17 }
 0x8dd   :  { %1011 = vmatmul.msk.f32.vlgmr.msrb.gmra.mxu0 %vm156_vm4, %v803_v50  ;;  %v805_v26 = vsel %vm156_vm4, %v803_v50, 0.0 }
 0x8de   :  { %806 = vadd.xlane.f32.xlu1 %v805_v26 }
 0x8e2   :  { %v1098_v51 = vpop.eup %1097 }
 0x8e3   :  { %v804_v52 = vmul.f32 %v1098_v51, %v1321_v22 }
 0x8e5   :  { %1012 = vmatmul.msk.f32.gmra.mxu0 %vm156_vm4, %v804_v52  ;;  %v808_v39 = vsel %vm156_vm4, %v804_v52, 0.0 }
 0x8e6   :  { %809 = vadd.xlane.f32.xlu2 %v808_v39 }
 0x8ea   :  { %v883_v16 = vpop.permute.xlu0 %882 }
 0x8f7   :  { %880 = vrot.lane.b32.xlu1 %v744_v25, %s1200_s8  ;;  %v1062_v25 = vld [vmem:[%s1473_s10] ss:$0 sm:$0xff] }
 0x951   :  { %v807_v53 = vpop.xlane.xlu1 %806 }
 0x952   :  { %vm811_vm5 = vcmp.gt.f32.partialorder %v807_v53, 0.0 }
 0x953   :  { %v813_v54 = vsel %vm811_vm5, %v807_v53, 1.0 }
 0x954   :  { %1099 = vrcp.f32 %v813_v54  ;;  %vm855_vm2 = vweird.f32 %v813_v54  ;;  %v861_v1 = vand.u32 2147483648, %v813_v54  ;;  %v859_v3 = vand.u32 2147483647, %v813_v54 }
 0x956   :  { %v862_v11 = vor.u32 1.1754944e-38, %v861_v1  ;;  %vm860_vm13 = vcmp.eq.f32.partialorder %v859_v3, 8.507059e+37 }
 0x959   :  { %v810_v55 = vpop.xlane.xlu2 %809 }
 0x95a   :  { %v1100_v56 = vpop.eup %1099  ;;  %vm812_vm7 = vcmp.gt.f32.partialorder %v810_v55, 0.0  ;;  %v844_v61 = vpop.f32.mrf.mxu0 }
 0x95b   :  { %v851_v22 = vmul.f32 %v1100_v56, %v813_v54  ;;  %v814_v57 = vsel %vm812_vm7, %v810_v55, 1.0  ;;  %vm856_vm8 = vweird.f32 %v1100_v56 }
 0x95c   :  { %1101 = vrcp.f32 %v814_v57  ;;  %v876_v2 = vand.u32 2147483648, %v814_v57  ;;  %v874_v6 = vand.u32 2147483647, %v814_v57  ;;  %vm857_vm10 = vmor %vm855_vm2, %vm856_vm8  ;;  %vm870_vm11 = vweird.f32 %v814_v57 }
 0x95d   :  { %v852_v58 = vsub.f32 1.0, %v851_v22 }
 0x95e   :  { %v877_v12 = vor.u32 1.1754944e-38, %v876_v2  ;;  %vm875_vm14 = vcmp.eq.f32.partialorder %v874_v6, 8.507059e+37 }
 0x95f   :  { %v853_v59 = vmul.f32 %v1100_v56, %v852_v58 }
 0x961   :  { %v854_v0 = vadd.f32 %v1100_v56, %v853_v59 }
 0x962   :  { %v1102_v60 = vpop.eup %1101  ;;  %v847_v8 = vpop.f32.mrf.mxu0 }
 0x963   :  { %v866_v62 = vmul.f32 %v1102_v60, %v814_v57  ;;  %vm871_vm9 = vweird.f32 %v1102_v60  ;;  %v858_v9 = vsel %vm857_vm10, %v1100_v56, %v854_v0 }
 0x964   :  { %vm872_vm12 = vmor %vm870_vm11, %vm871_vm9  ;;  %v863_v14 = vsel %vm860_vm13, %v862_v11, %v858_v9 }
 0x965   :  { %v867_v63 = vsub.f32 1.0, %v866_v62  ;;  %v864_v19 = vmul.f32 %v863_v14, %v844_v61 }
 0x967   :  { %v868_v4 = vmul.f32 %v1102_v60, %v867_v63 }
 0x969   :  { %v869_v10 = vadd.f32 %v1102_v60, %v868_v4  ;;  %v881_v18 = vpop.permute.xlu1 %880 }
 0x96a   :  { %v886_v46 = vadd.f32 %v881_v18, %v864_v19 }
 0x96b   :  { %v873_v13 = vsel %vm872_vm12, %v1102_v60, %v869_v10 }
 0x96c   :  { %v878_v45 = vsel %vm875_vm14, %v877_v12, %v873_v13 }
 0x96d   :  { %v879_v15 = vmul.f32 %v878_v45, %v847_v8 }
 0x96f   :  { %v887_v21 = vadd.f32 %v883_v16, %v879_v15 }
 0x971   :  { %906 = vmatpush.msrb.mxu2 %v887_v21 }
 0x973   :  { %907 = vmatpush.msrb.mxu2 %v886_v46 }
 0x974   :  { %1013 = vmatmul.msk.f32.vlgmr.msrb.gmra.mxu2 %vm156_vm4, %v888_v23 }
 0x9f7   :  { %v909_v24 = vpop.f32.mrf.mxu2 }
 0x9f8   :  { %1015 = vmatmul.msk.f32.vlgmr.msrb.gmra.mxu1 %vm755_vm3, %v909_v24 }
 0xa75   :  { %v941_v27 = vpop.f32.mrf.mxu1 }
 0xa76   :  { %v942_v28 = vadd.f32 %v1062_v25, %v941_v27 }
 0xa78   :  { %v945_v29 = vsel %vm944_vm15, %v942_v28, -inf }
 0xa79   :  { %946 = vmax.xlane.f32.xlu2 %v945_v29 }
 0xaec   :  { %v947_v30 = vpop.xlane.xlu2 %946 }
 0xaed   :  { %v948_v31 = vsub.f32 %v942_v28, %v947_v30 }
 0xaef   :  { %v949_v5 = vmul.f32 1.442695, %v948_v31 }
 0xaf1   :  { %1103 = vpow2.f32 %v949_v5 }
 0xaf7   :  { %v1104_v32 = vpop.eup %1103 }
 0xaf8   :  { %v951_v33 = vsel %vm944_vm15, %v1104_v32, 0.0 }
 0xaf9   :  { %952 = vadd.xlane.f32.xlu2 %v951_v33 }
 0xb6c   :  { %v953_v34 = vpop.xlane.xlu2 %952 }
 0xb6d   :  { %1105 = vlog2.f32 %v953_v34 }
 0xb73   :  { %v1106_v35 = vpop.eup %1105 }
 0xb74   :  { %v955_v36 = vmul.f32 0.6931472, %v1106_v35 }
 0xb76   :  { %v956_v37 = vsub.f32 %v948_v31, %v955_v36 }
 0xb78   :  { %957 = vst.msk [vmem:[#allocation7] sm:$0x3] %vm944_vm15, %v956_v37 }
 0xb79   :  { %968 = dma.vmem_to_hbm [thread:$0]  %s964_s19, 32, %s966_s20, [#allocation4]  }
 0xb7a   :  { %1183 = dma.done.wait [#allocation4], 32  }
 0xb7b   :  { %1184 = vsyncadd [#allocation4], 4294967264 }
 0xb7c   :  { %973 = vsyncpa [#allocation3], 1 }
 0xb7d   :  { %974 = vsyncpa [#allocation6], 1 }
 0xb7e   :  { %975 = vsyncpa [#allocation4], 1 }

</bundles_post_ra>
